<compile_context>
chip_gen: v6e
topology: v6e:2x2x1
jax: 0.10.0
libtpu: 0.0.40
codegen_flags: <defaults>
</compile_context>

<pallas_src>
import math

import jax
import jax.numpy as jnp
from jax.experimental import pallas as pl
from jax.experimental.pallas import tpu as pltpu


# ----------------------------------------------------------------------------
# Kernel 1: fused Q/K/V input projections, all heads at once.
# ----------------------------------------------------------------------------
def _qkv_projection_kernel(q_ref, k_ref, v_ref,
                           wq_ref, bq_ref, wk_ref, bk_ref, wv_ref, bv_ref,
                           qp_ref, kp_ref, vp_ref):
    """One grid step = (batch b, sequence block si).

    q/k/v_ref    : (1, TS, D)       input blocks
    w*_ref       : (D, D)           projection weights, (in, out) layout
    b*_ref       : (1, D)           biases (f32)
    qp/kp/vp_ref : (1, H, TS, d_k)  head-major projected outputs
    """
    num_heads = qp_ref.shape[1]
    d_k = qp_ref.shape[-1]

    def project(x_ref, w_ref, b_ref, o_ref):
        # Full-width matmul: N = D fills the MXU lanes (vs. N = d_k per head).
        y = (jnp.dot(x_ref[0], w_ref[...], preferred_element_type=jnp.float32)
             + b_ref[...])
        y = y.astype(o_ref.dtype)
        # Static per-head slab stores: each (TS, d_k), aligned to the output ref.
        for h in range(num_heads):
            o_ref[0, h] = y[:, h * d_k:(h + 1) * d_k]

    project(q_ref, wq_ref, bq_ref, qp_ref)
    project(k_ref, wk_ref, bk_ref, kp_ref)
    project(v_ref, wv_ref, bv_ref, vp_ref)


# ----------------------------------------------------------------------------
# Kernel 2: per-head attention + accumulated output projection.
# ----------------------------------------------------------------------------
def _make_attention_kernel(return_attn: bool):
    def kernel(qp_ref, kp_ref, vp_ref, wo_ref, bo_ref, out_ref, *rest):
        """One grid step = (batch b, query block qi, head h); h is the reduction axis.

        qp_ref   : (1, 1, TQ, d_k)  projected queries for (b, h, qi)
        kp/vp_ref: (1, 1, S, d_k)   projected keys/values for (b, h)
        wo_ref   : (1, d_k, D)      head-h row-slice of W_o
        bo_ref   : (1, D)           output bias (f32)
        out_ref  : (1, TQ, D)       same block across h -> accumulator-resident
        attn_ref : (1, 1, TQ, S)    optional attention weights for (b, h, qi)
        acc_ref  : (TQ, D) f32      VMEM accumulator scratch
        """
        if return_attn:
            attn_ref, acc_ref = rest
        else:
            (acc_ref,) = rest

        h = pl.program_id(2)
        d_k = qp_ref.shape[-1]
        inv_scale = 1.0 / math.sqrt(d_k)

        @pl.when(h == 0)
        def _():
            acc_ref[...] = jnp.zeros_like(acc_ref)

        q = qp_ref[0, 0]            # (TQ, d_k)  compute dtype
        k = kp_ref[0, 0]            # (S,  d_k)
        v = vp_ref[0, 0]            # (S,  d_k)
        mx_dtype = q.dtype          # MXU operand dtype (bf16 when requested)

        # scores = (q @ k^T) / sqrt(d_k): contract d_k directly, f32 accumulate.
        scores = jax.lax.dot_general(
            q, k, (((1,), (1,)), ((), ())),
            preferred_element_type=jnp.float32) * inv_scale       # (TQ, S) f32

        # Numerically stable softmax; single live (TQ, S) f32 temp, EUP reciprocal.
        m = jnp.max(scores, axis=-1, keepdims=True)
        p = jnp.exp(scores - m)
        denom = jnp.sum(p, axis=-1, keepdims=True)
        p = p * pl.reciprocal(denom, approx=True)

        if return_attn:
            attn_ref[0, 0] = p.astype(attn_ref.dtype)

        ctx = jnp.dot(p.astype(mx_dtype), v,
                      preferred_element_type=jnp.float32)         # (TQ, d_k) f32

        # Output projection accumulated per head: out = sum_h ctx_h @ W_o[h] + b_o.
        acc_ref[...] += jnp.dot(ctx.astype(mx_dtype), wo_ref[0],
                                preferred_element_type=jnp.float32)

        @pl.when(h == pl.num_programs(2) - 1)
        def _():
            out_ref[0] = (acc_ref[...] + bo_ref[...]).astype(out_ref.dtype)

    return kernel


# ----------------------------------------------------------------------------
# Wrapper
# ----------------------------------------------------------------------------
def _pick_block(s, prefer_two_blocks):
    for cand in (256, 128, 64, 32, 16, 8):
        if s % cand == 0 and (not prefer_two_blocks or s // cand >= 2):
            return cand
    return s


def multi_head_attention(query, key, value, params, *, num_heads: int,
                         block_q=None, block_s=None,
                         return_attn: bool = True, attn_dtype=jnp.float32,
                         compute_dtype=None, vmem_limit_bytes=None):
    """Pallas MHA forward. query/key/value: (B, S, D). Weights pre-transposed (in, out).

    Returns (out, attn) if return_attn else out.
    """
    B, S, D = query.shape
    assert D % num_heads == 0
    d_k = D // num_heads
    wq, bq, wk, bk, wv, bv, wo, bo = params  # w*: (D, D), b*: (1, D)

    cdt = compute_dtype if compute_dtype is not None else query.dtype
    out_dtype = query.dtype

    if block_q is None:
        block_q = _pick_block(S, prefer_two_blocks=True)    # nq >= 2 helps v7x megacore
    if block_s is None:
        block_s = _pick_block(S, prefer_two_blocks=False)
    assert S % block_q == 0 and S % block_s == 0
    nq, ns = S // block_q, S // block_s

    # Cast MXU operands once in the wrapper; biases stay f32 (added to f32 accum).
    q_in, k_in, v_in = (x.astype(cdt) for x in (query, key, value))
    wq_c, wk_c, wv_c = (w.astype(cdt) for w in (wq, wk, wv))
    bq_f, bk_f, bv_f, bo_f = (b.astype(jnp.float32) for b in (bq, bk, bv, bo))
    wo_h = wo.reshape(num_heads, d_k, D).astype(cdt)  # rows [h*d_k,(h+1)*d_k) of W_o

    extra_cp = {}
    if vmem_limit_bytes is not None:
        extra_cp["vmem_limit_bytes"] = vmem_limit_bytes

    # ---- pass 1: fused Q/K/V projections (computed once per token, all heads) ----
    x_spec = pl.BlockSpec((1, block_s, D), lambda b, si: (b, si, 0))
    w_spec = pl.BlockSpec((D, D), lambda b, si: (0, 0))
    b_spec = pl.BlockSpec((1, D), lambda b, si: (0, 0))
    hproj_spec = pl.BlockSpec((1, num_heads, block_s, d_k),
                              lambda b, si: (b, 0, si, 0))
    hproj_shape = jax.ShapeDtypeStruct((B, num_heads, S, d_k), cdt)

    q_h, k_h, v_h = pl.pallas_call(
        _qkv_projection_kernel,
        out_shape=(hproj_shape, hproj_shape, hproj_shape),
        grid_spec=pltpu.PrefetchScalarGridSpec(
            num_scalar_prefetch=0,
            grid=(B, ns),
            in_specs=[x_spec, x_spec, x_spec,
                      w_spec, b_spec, w_spec, b_spec, w_spec, b_spec],
            out_specs=(hproj_spec, hproj_spec, hproj_spec),
        ),
        compiler_params=pltpu.CompilerParams(
            dimension_semantics=("parallel", "parallel"), **extra_cp),
    )(q_in, k_in, v_in, wq_c, bq_f, wk_c, bk_f, wv_c, bv_f)

    # ---- pass 2: per-head attention with accumulated output projection ----
    qp_spec = pl.BlockSpec((1, 1, block_q, d_k), lambda b, qi, h: (b, h, qi, 0))
    kvp_spec = pl.BlockSpec((1, 1, S, d_k), lambda b, qi, h: (b, h, 0, 0))
    wo_spec = pl.BlockSpec((1, d_k, D), lambda b, qi, h: (h, 0, 0))
    bo_spec = pl.BlockSpec((1, D), lambda b, qi, h: (0, 0))
    out_spec = pl.BlockSpec((1, block_q, D), lambda b, qi, h: (b, qi, 0))

    out_shapes = [jax.ShapeDtypeStruct((B, S, D), out_dtype)]
    out_specs = [out_spec]
    if return_attn:
        out_shapes.append(jax.ShapeDtypeStruct((B, num_heads, S, S), attn_dtype))
        out_specs.append(pl.BlockSpec((1, 1, block_q, S),
                                      lambda b, qi, h: (b, h, qi, 0)))

    results = pl.pallas_call(
        _make_attention_kernel(return_attn),
        out_shape=tuple(out_shapes),
        grid_spec=pltpu.PrefetchScalarGridSpec(
            num_scalar_prefetch=0,
            grid=(B, nq, num_heads),
            in_specs=[qp_spec, kvp_spec, kvp_spec, wo_spec, bo_spec],
            out_specs=tuple(out_specs),
            scratch_shapes=[pltpu.VMEM((block_q, D), jnp.float32)],
        ),
        compiler_params=pltpu.CompilerParams(
            dimension_semantics=("parallel", "parallel", "arbitrary"), **extra_cp),
    )(q_h, k_h, v_h, wo_h, bo_f)

    if return_attn:
        out, attn = results
        return out, attn
    (out,) = results
    return out


# ----------------------------------------------------------------------------
# Reference + demo
# ----------------------------------------------------------------------------
def init_params(key, d_model):
    """Deterministic nn.Linear-style init. Weights already transposed to (in, out)."""
    bound = 1.0 / math.sqrt(d_model)
    ks = jax.random.split(key, 8)
    params = []
    for i in range(4):
        w = jax.random.uniform(ks[2 * i], (d_model, d_model),
                               minval=-bound, maxval=bound, dtype=jnp.float32)
        b = jax.random.uniform(ks[2 * i + 1], (1, d_model),
                               minval=-bound, maxval=bound, dtype=jnp.float32)
        params.extend([w, b])  # kernel computes x @ w + b
    return tuple(params)


def reference_mha(query, key, value, params, *, num_heads: int):
    """Pure-JAX reference mirroring the PyTorch forward (mask=None, eval mode)."""
    wq, bq, wk, bk, wv, bv, wo, bo = params
    B, S, D = query.shape
    d_k = D // num_heads

    def split_heads(x):
        return x.reshape(B, S, num_heads, d_k).transpose(0, 2, 1, 3)

    Q = split_heads(query @ wq + bq)
    K = split_heads(key @ wk + bk)
    V = split_heads(value @ wv + bv)
    scores = jnp.einsum("bhqd,bhkd->bhqk", Q, K) / math.sqrt(d_k)
    attn = jax.nn.softmax(scores, axis=-1)
    ctx = jnp.einsum("bhqk,bhkd->bhqd", attn, V)
    ctx = ctx.transpose(0, 2, 1, 3).reshape(B, S, D)
    return ctx @ wo + bo, attn


if __name__ == "__main__":
    B, S, D, H = 2, 8, 32, 4

    root = jax.random.PRNGKey(0)
    k_q, k_k, k_v, k_p = jax.random.split(root, 4)
    query = jax.random.normal(k_q, (B, S, D), dtype=jnp.float32)
    key_t = jax.random.normal(k_k, (B, S, D), dtype=jnp.float32)
    value = jax.random.normal(k_v, (B, S, D), dtype=jnp.float32)
    params = init_params(k_p, D)

    ref_out, ref_attn = reference_mha(query, key_t, value, params, num_heads=H)

    # Full-semantics path: f32 compute, attention weights returned (as the module does).
    out, attn = multi_head_attention(query, key_t, value, params, num_heads=H,
                                     return_attn=True)
    out = jax.block_until_ready(out)
    attn = jax.block_until_ready(attn)
    assert out.shape == (B, S, D) and attn.shape == (B, H, S, S)
    assert jnp.allclose(out, ref_out, atol=5e-3, rtol=5e-3), "output mismatch"
    assert jnp.allclose(attn, ref_attn, atol=5e-3, rtol=5e-3), "attention weights mismatch"

    # Performance path: bf16 MXU operands, no attention-weights writeback.
    out_fast = multi_head_attention(query, key_t, value, params, num_heads=H,
                                    return_attn=False, compute_dtype=jnp.bfloat16)
    out_fast = jax.block_until_ready(out_fast)
    assert out_fast.shape == (B, S, D)
    assert jnp.allclose(out_fast.astype(jnp.float32), ref_out,
                        atol=5e-2, rtol=5e-2), "bf16 output mismatch"

    print("KERNEL_OK")
</pallas_src>

<mosaic_0001>
module attributes {stable_mosaic.version = 11 : i64} {
  func.func @_qkv_projection_kernel(%arg0: i32, %arg1: i32, %arg2: memref<1x8x32xf32, #tpu.memory_space<vmem>>, %arg3: memref<1x8x32xf32, #tpu.memory_space<vmem>>, %arg4: memref<1x8x32xf32, #tpu.memory_space<vmem>>, %arg5: memref<32x32xf32, #tpu.memory_space<vmem>>, %arg6: memref<1x32xf32, #tpu.memory_space<vmem>>, %arg7: memref<32x32xf32, #tpu.memory_space<vmem>>, %arg8: memref<1x32xf32, #tpu.memory_space<vmem>>, %arg9: memref<32x32xf32, #tpu.memory_space<vmem>>, %arg10: memref<1x32xf32, #tpu.memory_space<vmem>>, %arg11: memref<1x4x8x8xf32, #tpu.memory_space<vmem>>, %arg12: memref<1x4x8x8xf32, #tpu.memory_space<vmem>>, %arg13: memref<1x4x8x8xf32, #tpu.memory_space<vmem>>) attributes {dimension_semantics = [#tpu.dimension_semantics<parallel>, #tpu.dimension_semantics<parallel>], iteration_bounds = array<i64: 2, 1>, scalar_prefetch = 0 : i64, scratch_operands = 0 : i64, tpu.core_type = #tpu.core_type<tc>, window_params = [{transform_indices = @transform_0, window_bounds = array<i64: 1, 8, 32>}, {transform_indices = @transform_1, window_bounds = array<i64: 1, 8, 32>}, {transform_indices = @transform_2, window_bounds = array<i64: 1, 8, 32>}, {pipeline_mode = #tpu.pipeline_mode<synchronous>, transform_indices = @transform_3, window_bounds = array<i64: 32, 32>}, {pipeline_mode = #tpu.pipeline_mode<synchronous>, transform_indices = @transform_4, window_bounds = array<i64: 1, 32>}, {pipeline_mode = #tpu.pipeline_mode<synchronous>, transform_indices = @transform_5, window_bounds = array<i64: 32, 32>}, {pipeline_mode = #tpu.pipeline_mode<synchronous>, transform_indices = @transform_6, window_bounds = array<i64: 1, 32>}, {pipeline_mode = #tpu.pipeline_mode<synchronous>, transform_indices = @transform_7, window_bounds = array<i64: 32, 32>}, {pipeline_mode = #tpu.pipeline_mode<synchronous>, transform_indices = @transform_8, window_bounds = array<i64: 1, 32>}, {transform_indices = @transform_9, window_bounds = array<i64: 1, 4, 8, 8>}, {transform_indices = @transform_10, window_bounds = array<i64: 1, 4, 8, 8>}, {transform_indices = @transform_11, window_bounds = array<i64: 1, 4, 8, 8>}]} {
    %c0 = arith.constant 0 : index
    %c0_0 = arith.constant 0 : index
    %c0_1 = arith.constant 0 : index
    %0 = vector.load %arg2[%c0, %c0_0, %c0_1] : memref<1x8x32xf32, #tpu.memory_space<vmem>>, vector<1x8x32xf32>
    %1 = vector.shape_cast %0 : vector<1x8x32xf32> to vector<8x32xf32>
    %c0_2 = arith.constant 0 : index
    %c0_3 = arith.constant 0 : index
    %2 = vector.load %arg5[%c0_2, %c0_3] : memref<32x32xf32, #tpu.memory_space<vmem>>, vector<32x32xf32>
    %cst = arith.constant dense<0.000000e+00> : vector<8x32xf32>
    %3 = tpu.matmul %1, %2, %cst {dimension_numbers = #tpu.dot_dimension_numbers<[1], [0], [0], [1], [0, 0, 1, 1], [], []>} : vector<8x32xf32>, vector<32x32xf32>, vector<8x32xf32> -> vector<8x32xf32>
    %c0_4 = arith.constant 0 : index
    %c0_5 = arith.constant 0 : index
    %4 = vector.load %arg6[%c0_4, %c0_5] : memref<1x32xf32, #tpu.memory_space<vmem>>, vector<1x32xf32>
    %5 = vector.broadcast %4 : vector<1x32xf32> to vector<8x32xf32>
    %6 = arith.addf %3, %5 : vector<8x32xf32>
    %7 = vector.extract_strided_slice %6 {offsets = [0, 0], sizes = [8, 8], strides = [1, 1]} : vector<8x32xf32> to vector<8x8xf32>
    %c0_6 = arith.constant 0 : index
    %c0_7 = arith.constant 0 : index
    %c0_8 = arith.constant 0 : index
    %c0_9 = arith.constant 0 : index
    %8 = vector.load %arg11[%c0_6, %c0_7, %c0_8, %c0_9] : memref<1x4x8x8xf32, #tpu.memory_space<vmem>>, vector<1x1x8x8xf32>
    %9 = vector.shape_cast %8 : vector<1x1x8x8xf32> to vector<8x8xf32>
    %10 = vector.shape_cast %7 : vector<8x8xf32> to vector<1x1x8x8xf32>
    tpu.vector_store %arg11[%c0_6, %c0_7, %c0_8, %c0_9], %10 {strides = array<i32>} : memref<1x4x8x8xf32, #tpu.memory_space<vmem>>, vector<1x1x8x8xf32>,
    %11 = vector.extract_strided_slice %6 {offsets = [0, 8], sizes = [8, 8], strides = [1, 1]} : vector<8x32xf32> to vector<8x8xf32>
    %c0_10 = arith.constant 0 : index
    %c1 = arith.constant 1 : index
    %c0_11 = arith.constant 0 : index
    %c0_12 = arith.constant 0 : index
    %12 = vector.load %arg11[%c0_10, %c1, %c0_11, %c0_12] : memref<1x4x8x8xf32, #tpu.memory_space<vmem>>, vector<1x1x8x8xf32>
    %13 = vector.shape_cast %12 : vector<1x1x8x8xf32> to vector<8x8xf32>
    %14 = vector.shape_cast %11 : vector<8x8xf32> to vector<1x1x8x8xf32>
    tpu.vector_store %arg11[%c0_10, %c1, %c0_11, %c0_12], %14 {strides = array<i32>} : memref<1x4x8x8xf32, #tpu.memory_space<vmem>>, vector<1x1x8x8xf32>,
    %15 = vector.extract_strided_slice %6 {offsets = [0, 16], sizes = [8, 8], strides = [1, 1]} : vector<8x32xf32> to vector<8x8xf32>
    %c0_13 = arith.constant 0 : index
    %c2 = arith.constant 2 : index
    %c0_14 = arith.constant 0 : index
    %c0_15 = arith.constant 0 : index
    %16 = vector.load %arg11[%c0_13, %c2, %c0_14, %c0_15] : memref<1x4x8x8xf32, #tpu.memory_space<vmem>>, vector<1x1x8x8xf32>
    %17 = vector.shape_cast %16 : vector<1x1x8x8xf32> to vector<8x8xf32>
    %18 = vector.shape_cast %15 : vector<8x8xf32> to vector<1x1x8x8xf32>
    tpu.vector_store %arg11[%c0_13, %c2, %c0_14, %c0_15], %18 {strides = array<i32>} : memref<1x4x8x8xf32, #tpu.memory_space<vmem>>, vector<1x1x8x8xf32>,
    %19 = vector.extract_strided_slice %6 {offsets = [0, 24], sizes = [8, 8], strides = [1, 1]} : vector<8x32xf32> to vector<8x8xf32>
    %c0_16 = arith.constant 0 : index
    %c3 = arith.constant 3 : index
    %c0_17 = arith.constant 0 : index
    %c0_18 = arith.constant 0 : index
    %20 = vector.load %arg11[%c0_16, %c3, %c0_17, %c0_18] : memref<1x4x8x8xf32, #tpu.memory_space<vmem>>, vector<1x1x8x8xf32>
    %21 = vector.shape_cast %20 : vector<1x1x8x8xf32> to vector<8x8xf32>
    %22 = vector.shape_cast %19 : vector<8x8xf32> to vector<1x1x8x8xf32>
    tpu.vector_store %arg11[%c0_16, %c3, %c0_17, %c0_18], %22 {strides = array<i32>} : memref<1x4x8x8xf32, #tpu.memory_space<vmem>>, vector<1x1x8x8xf32>,
    %c0_19 = arith.constant 0 : index
    %c0_20 = arith.constant 0 : index
    %c0_21 = arith.constant 0 : index
    %23 = vector.load %arg3[%c0_19, %c0_20, %c0_21] : memref<1x8x32xf32, #tpu.memory_space<vmem>>, vector<1x8x32xf32>
    %24 = vector.shape_cast %23 : vector<1x8x32xf32> to vector<8x32xf32>
    %c0_22 = arith.constant 0 : index
    %c0_23 = arith.constant 0 : index
    %25 = vector.load %arg7[%c0_22, %c0_23] : memref<32x32xf32, #tpu.memory_space<vmem>>, vector<32x32xf32>
    %cst_24 = arith.constant dense<0.000000e+00> : vector<8x32xf32>
    %26 = tpu.matmul %24, %25, %cst_24 {dimension_numbers = #tpu.dot_dimension_numbers<[1], [0], [0], [1], [0, 0, 1, 1], [], []>} : vector<8x32xf32>, vector<32x32xf32>, vector<8x32xf32> -> vector<8x32xf32>
    %c0_25 = arith.constant 0 : index
    %c0_26 = arith.constant 0 : index
    %27 = vector.load %arg8[%c0_25, %c0_26] : memref<1x32xf32, #tpu.memory_space<vmem>>, vector<1x32xf32>
    %28 = vector.broadcast %27 : vector<1x32xf32> to vector<8x32xf32>
    %29 = arith.addf %26, %28 : vector<8x32xf32>
    %30 = vector.extract_strided_slice %29 {offsets = [0, 0], sizes = [8, 8], strides = [1, 1]} : vector<8x32xf32> to vector<8x8xf32>
    %c0_27 = arith.constant 0 : index
    %c0_28 = arith.constant 0 : index
    %c0_29 = arith.constant 0 : index
    %c0_30 = arith.constant 0 : index
    %31 = vector.load %arg12[%c0_27, %c0_28, %c0_29, %c0_30] : memref<1x4x8x8xf32, #tpu.memory_space<vmem>>, vector<1x1x8x8xf32>
    %32 = vector.shape_cast %31 : vector<1x1x8x8xf32> to vector<8x8xf32>
    %33 = vector.shape_cast %30 : vector<8x8xf32> to vector<1x1x8x8xf32>
    tpu.vector_store %arg12[%c0_27, %c0_28, %c0_29, %c0_30], %33 {strides = array<i32>} : memref<1x4x8x8xf32, #tpu.memory_space<vmem>>, vector<1x1x8x8xf32>,
    %34 = vector.extract_strided_slice %29 {offsets = [0, 8], sizes = [8, 8], strides = [1, 1]} : vector<8x32xf32> to vector<8x8xf32>
    %c0_31 = arith.constant 0 : index
    %c1_32 = arith.constant 1 : index
    %c0_33 = arith.constant 0 : index
    %c0_34 = arith.constant 0 : index
    %35 = vector.load %arg12[%c0_31, %c1_32, %c0_33, %c0_34] : memref<1x4x8x8xf32, #tpu.memory_space<vmem>>, vector<1x1x8x8xf32>
    %36 = vector.shape_cast %35 : vector<1x1x8x8xf32> to vector<8x8xf32>
    %37 = vector.shape_cast %34 : vector<8x8xf32> to vector<1x1x8x8xf32>
    tpu.vector_store %arg12[%c0_31, %c1_32, %c0_33, %c0_34], %37 {strides = array<i32>} : memref<1x4x8x8xf32, #tpu.memory_space<vmem>>, vector<1x1x8x8xf32>,
    %38 = vector.extract_strided_slice %29 {offsets = [0, 16], sizes = [8, 8], strides = [1, 1]} : vector<8x32xf32> to vector<8x8xf32>
    %c0_35 = arith.constant 0 : index
    %c2_36 = arith.constant 2 : index
    %c0_37 = arith.constant 0 : index
    %c0_38 = arith.constant 0 : index
    %39 = vector.load %arg12[%c0_35, %c2_36, %c0_37, %c0_38] : memref<1x4x8x8xf32, #tpu.memory_space<vmem>>, vector<1x1x8x8xf32>
    %40 = vector.shape_cast %39 : vector<1x1x8x8xf32> to vector<8x8xf32>
    %41 = vector.shape_cast %38 : vector<8x8xf32> to vector<1x1x8x8xf32>
    tpu.vector_store %arg12[%c0_35, %c2_36, %c0_37, %c0_38], %41 {strides = array<i32>} : memref<1x4x8x8xf32, #tpu.memory_space<vmem>>, vector<1x1x8x8xf32>,
    %42 = vector.extract_strided_slice %29 {offsets = [0, 24], sizes = [8, 8], strides = [1, 1]} : vector<8x32xf32> to vector<8x8xf32>
    %c0_39 = arith.constant 0 : index
    %c3_40 = arith.constant 3 : index
    %c0_41 = arith.constant 0 : index
    %c0_42 = arith.constant 0 : index
    %43 = vector.load %arg12[%c0_39, %c3_40, %c0_41, %c0_42] : memref<1x4x8x8xf32, #tpu.memory_space<vmem>>, vector<1x1x8x8xf32>
    %44 = vector.shape_cast %43 : vector<1x1x8x8xf32> to vector<8x8xf32>
    %45 = vector.shape_cast %42 : vector<8x8xf32> to vector<1x1x8x8xf32>
    tpu.vector_store %arg12[%c0_39, %c3_40, %c0_41, %c0_42], %45 {strides = array<i32>} : memref<1x4x8x8xf32, #tpu.memory_space<vmem>>, vector<1x1x8x8xf32>,
    %c0_43 = arith.constant 0 : index
    %c0_44 = arith.constant 0 : index
    %c0_45 = arith.constant 0 : index
    %46 = vector.load %arg4[%c0_43, %c0_44, %c0_45] : memref<1x8x32xf32, #tpu.memory_space<vmem>>, vector<1x8x32xf32>
    %47 = vector.shape_cast %46 : vector<1x8x32xf32> to vector<8x32xf32>
    %c0_46 = arith.constant 0 : index
    %c0_47 = arith.constant 0 : index
    %48 = vector.load %arg9[%c0_46, %c0_47] : memref<32x32xf32, #tpu.memory_space<vmem>>, vector<32x32xf32>
    %cst_48 = arith.constant dense<0.000000e+00> : vector<8x32xf32>
    %49 = tpu.matmul %47, %48, %cst_48 {dimension_numbers = #tpu.dot_dimension_numbers<[1], [0], [0], [1], [0, 0, 1, 1], [], []>} : vector<8x32xf32>, vector<32x32xf32>, vector<8x32xf32> -> vector<8x32xf32>
    %c0_49 = arith.constant 0 : index
    %c0_50 = arith.constant 0 : index
    %50 = vector.load %arg10[%c0_49, %c0_50] : memref<1x32xf32, #tpu.memory_space<vmem>>, vector<1x32xf32>
    %51 = vector.broadcast %50 : vector<1x32xf32> to vector<8x32xf32>
    %52 = arith.addf %49, %51 : vector<8x32xf32>
    %53 = vector.extract_strided_slice %52 {offsets = [0, 0], sizes = [8, 8], strides = [1, 1]} : vector<8x32xf32> to vector<8x8xf32>
    %c0_51 = arith.constant 0 : index
    %c0_52 = arith.constant 0 : index
    %c0_53 = arith.constant 0 : index
    %c0_54 = arith.constant 0 : index
    %54 = vector.load %arg13[%c0_51, %c0_52, %c0_53, %c0_54] : memref<1x4x8x8xf32, #tpu.memory_space<vmem>>, vector<1x1x8x8xf32>
    %55 = vector.shape_cast %54 : vector<1x1x8x8xf32> to vector<8x8xf32>
    %56 = vector.shape_cast %53 : vector<8x8xf32> to vector<1x1x8x8xf32>
    tpu.vector_store %arg13[%c0_51, %c0_52, %c0_53, %c0_54], %56 {strides = array<i32>} : memref<1x4x8x8xf32, #tpu.memory_space<vmem>>, vector<1x1x8x8xf32>,
    %57 = vector.extract_strided_slice %52 {offsets = [0, 8], sizes = [8, 8], strides = [1, 1]} : vector<8x32xf32> to vector<8x8xf32>
    %c0_55 = arith.constant 0 : index
    %c1_56 = arith.constant 1 : index
    %c0_57 = arith.constant 0 : index
    %c0_58 = arith.constant 0 : index
    %58 = vector.load %arg13[%c0_55, %c1_56, %c0_57, %c0_58] : memref<1x4x8x8xf32, #tpu.memory_space<vmem>>, vector<1x1x8x8xf32>
    %59 = vector.shape_cast %58 : vector<1x1x8x8xf32> to vector<8x8xf32>
    %60 = vector.shape_cast %57 : vector<8x8xf32> to vector<1x1x8x8xf32>
    tpu.vector_store %arg13[%c0_55, %c1_56, %c0_57, %c0_58], %60 {strides = array<i32>} : memref<1x4x8x8xf32, #tpu.memory_space<vmem>>, vector<1x1x8x8xf32>,
    %61 = vector.extract_strided_slice %52 {offsets = [0, 16], sizes = [8, 8], strides = [1, 1]} : vector<8x32xf32> to vector<8x8xf32>
    %c0_59 = arith.constant 0 : index
    %c2_60 = arith.constant 2 : index
    %c0_61 = arith.constant 0 : index
    %c0_62 = arith.constant 0 : index
    %62 = vector.load %arg13[%c0_59, %c2_60, %c0_61, %c0_62] : memref<1x4x8x8xf32, #tpu.memory_space<vmem>>, vector<1x1x8x8xf32>
    %63 = vector.shape_cast %62 : vector<1x1x8x8xf32> to vector<8x8xf32>
    %64 = vector.shape_cast %61 : vector<8x8xf32> to vector<1x1x8x8xf32>
    tpu.vector_store %arg13[%c0_59, %c2_60, %c0_61, %c0_62], %64 {strides = array<i32>} : memref<1x4x8x8xf32, #tpu.memory_space<vmem>>, vector<1x1x8x8xf32>,
    %65 = vector.extract_strided_slice %52 {offsets = [0, 24], sizes = [8, 8], strides = [1, 1]} : vector<8x32xf32> to vector<8x8xf32>
    %c0_63 = arith.constant 0 : index
    %c3_64 = arith.constant 3 : index
    %c0_65 = arith.constant 0 : index
    %c0_66 = arith.constant 0 : index
    %66 = vector.load %arg13[%c0_63, %c3_64, %c0_65, %c0_66] : memref<1x4x8x8xf32, #tpu.memory_space<vmem>>, vector<1x1x8x8xf32>
    %67 = vector.shape_cast %66 : vector<1x1x8x8xf32> to vector<8x8xf32>
    %68 = vector.shape_cast %65 : vector<8x8xf32> to vector<1x1x8x8xf32>
    tpu.vector_store %arg13[%c0_63, %c3_64, %c0_65, %c0_66], %68 {strides = array<i32>} : memref<1x4x8x8xf32, #tpu.memory_space<vmem>>, vector<1x1x8x8xf32>,
    return
  }
  func.func @transform_0(%arg0: i32, %arg1: i32) -> (i32, i32, i32) {
    %c0_i32 = arith.constant 0 : i32
    %c0_i32_0 = arith.constant 0 : i32
    return %arg0, %arg1, %c0_i32 : i32, i32, i32
  }
  func.func @transform_1(%arg0: i32, %arg1: i32) -> (i32, i32, i32) {
    %c0_i32 = arith.constant 0 : i32
    %c0_i32_0 = arith.constant 0 : i32
    return %arg0, %arg1, %c0_i32 : i32, i32, i32
  }
  func.func @transform_2(%arg0: i32, %arg1: i32) -> (i32, i32, i32) {
    %c0_i32 = arith.constant 0 : i32
    %c0_i32_0 = arith.constant 0 : i32
    return %arg0, %arg1, %c0_i32 : i32, i32, i32
  }
  func.func @transform_3(%arg0: i32, %arg1: i32) -> (i32, i32) {
    %c0_i32 = arith.constant 0 : i32
    %c0_i32_0 = arith.constant 0 : i32
    %c0_i32_1 = arith.constant 0 : i32
    return %c0_i32, %c0_i32_0 : i32, i32
  }
  func.func @transform_4(%arg0: i32, %arg1: i32) -> (i32, i32) {
    %c0_i32 = arith.constant 0 : i32
    %c0_i32_0 = arith.constant 0 : i32
    %c0_i32_1 = arith.constant 0 : i32
    return %c0_i32, %c0_i32_0 : i32, i32
  }
  func.func @transform_5(%arg0: i32, %arg1: i32) -> (i32, i32) {
    %c0_i32 = arith.constant 0 : i32
    %c0_i32_0 = arith.constant 0 : i32
    %c0_i32_1 = arith.constant 0 : i32
    return %c0_i32, %c0_i32_0 : i32, i32
  }
  func.func @transform_6(%arg0: i32, %arg1: i32) -> (i32, i32) {
    %c0_i32 = arith.constant 0 : i32
    %c0_i32_0 = arith.constant 0 : i32
    %c0_i32_1 = arith.constant 0 : i32
    return %c0_i32, %c0_i32_0 : i32, i32
  }
  func.func @transform_7(%arg0: i32, %arg1: i32) -> (i32, i32) {
    %c0_i32 = arith.constant 0 : i32
    %c0_i32_0 = arith.constant 0 : i32
    %c0_i32_1 = arith.constant 0 : i32
    return %c0_i32, %c0_i32_0 : i32, i32
  }
  func.func @transform_8(%arg0: i32, %arg1: i32) -> (i32, i32) {
    %c0_i32 = arith.constant 0 : i32
    %c0_i32_0 = arith.constant 0 : i32
    %c0_i32_1 = arith.constant 0 : i32
    return %c0_i32, %c0_i32_0 : i32, i32
  }
  func.func @transform_9(%arg0: i32, %arg1: i32) -> (i32, i32, i32, i32) {
    %c0_i32 = arith.constant 0 : i32
    %c0_i32_0 = arith.constant 0 : i32
    %c0_i32_1 = arith.constant 0 : i32
    return %arg0, %c0_i32, %arg1, %c0_i32_0 : i32, i32, i32, i32
  }
  func.func @transform_10(%arg0: i32, %arg1: i32) -> (i32, i32, i32, i32) {
    %c0_i32 = arith.constant 0 : i32
    %c0_i32_0 = arith.constant 0 : i32
    %c0_i32_1 = arith.constant 0 : i32
    return %arg0, %c0_i32, %arg1, %c0_i32_0 : i32, i32, i32, i32
  }
  func.func @transform_11(%arg0: i32, %arg1: i32) -> (i32, i32, i32, i32) {
    %c0_i32 = arith.constant 0 : i32
    %c0_i32_0 = arith.constant 0 : i32
    %c0_i32_1 = arith.constant 0 : i32
    return %arg0, %c0_i32, %arg1, %c0_i32_0 : i32, i32, i32, i32
  }
}

</mosaic_0001>

<bundles_post_ra>
// kernel: tpu_custom_call.1
= control target key start
LH: loop header
LB: loop body
LE: loop exit
PB: predicated region body
PF: predicated region fallthrough
CT: control target
= control target key end

     0   :  { %s2148_s0 = inlined_call_operand.hbm [shape: f32[2,8,32], index: 0, kind: input, shape index: {}]   ;;  %s2149_s1 = inlined_call_operand.hbm [shape: f32[2,8,32], index: 1, kind: input, shape index: {}]   ;;  %s2150_s2 = inlined_call_operand.hbm [shape: f32[2,8,32], index: 2, kind: input, shape index: {}]   ;;  %s2151_s3 = inlined_call_operand.hbm [shape: f32[32,32], index: 3, kind: input, shape index: {}]   ;;  %s2152_s4 = inlined_call_operand.vmem [shape: f32[1,32], index: 4, kind: input, shape index: {}]   ;;  %s2153_s5 = inlined_call_operand.hbm [shape: f32[32,32], index: 5, kind: input, shape index: {}]   ;;  %s2154_s6 = inlined_call_operand.vmem [shape: f32[1,32], index: 6, kind: input, shape index: {}]   ;;  %s2155_s7 = inlined_call_operand.hbm [shape: f32[32,32], index: 7, kind: input, shape index: {}]   ;;  %s2156_s8 = inlined_call_operand.vmem [shape: f32[1,32], index: 8, kind: input, shape index: {}]   ;;  %s2157_s9 = inlined_call_operand.hbm [shape: f32[2,4,8,8], index: 9, kind: output, shape index: {0}]   ;;  %s2158_s10 = inlined_call_operand.hbm [shape: f32[2,4,8,8], index: 10, kind: output, shape index: {1}]   ;;  %s2159_s11 = inlined_call_operand.hbm [shape: f32[2,4,8,8], index: 11, kind: output, shape index: {2}]  }
   0x1   :  { %2181 = sst [smem:[#allocation29_spill]] %s2149_s1 }
   0x2   :  { %2182 = sst [smem:[#allocation30_spill]] %s2151_s3 }
   0x3   :  { %2183 = sst [smem:[#allocation31_spill]] %s2153_s5 }
   0x4   :  { %2184 = sst [smem:[#allocation32_spill]] %s2157_s9 }
   0x5   :  { %2185 = sst [smem:[#allocation33_spill]] %s2158_s10 }
   0x6   :  { %2186 = sst [smem:[#allocation34_spill]] %s2159_s11 }
   0x7   :  { %17 = vsyncpa [#allocation3], 0 }
   0x8   :  { %19 = vsyncpa [#allocation3 + $0x1], 0 }
   0x9   :  { %20 = vsyncpa [#allocation6], 0 }
   0xa   :  { %22 = vsyncpa [#allocation6 + $0x1], 0 }
   0xb   :  { %23 = vsyncpa [#allocation9], 0 }
   0xc   :  { %24 = vsyncpa [#allocation12], 0 }
   0xd   :  { %25 = vsyncpa [#allocation4], 0 }
   0xe   :  { %27 = vsyncpa [#allocation4 + $0x1], 0 }
   0xf   :  { %28 = vsyncpa [#allocation15], 0 }
  0x10   :  { %30 = vsyncpa [#allocation15 + $0x1], 0  ;;  %s1764_s17 = smov 0   ;;  %s1766_s18 = smov 0  }
  0x11   :  { %s1768_s19 = smov 0   ;;  %s1770_s20 = smov 0  }
  0x12   :  { %s1772_s21 = smov 0   ;;  %s1774_s22 = smov 0  }
  0x13 LB: > { %2187 = sst [smem:[#allocation23_spill]] %s1664_s17  ;;  %s1795_s23 = sadd.s32 4294967295, %s1684_s22   ;;  %s1684_s22 = sphi %s1774_s22, %s36_s22   ;;  %s1680_s21 = sphi %s1772_s21, %s2228_s21   ;;  %s1676_s20 = sphi %s1770_s20, %s2232_s20   ;;  %s1672_s19 = sphi %s1768_s19, %s2231_s19   ;;  %s1668_s18 = sphi %s1766_s18, %s2230_s18   ;;  %s1664_s17 = sphi %s1764_s17, %s2229_s17  }
  0x14   : > { %2188 = sst [smem:[#allocation24_spill]] %s1680_s21  ;;  %s2160_s24 = sadd.s32 4294967294, %s1684_s22  }
  0x15   : > { %2189 = sst [smem:[#allocation25_spill]] %s1684_s22  ;;  %p70_p0 = scmp.ne.s32.totalorder %s1668_s18, %s1664_s17 }
  0x16   : > { %p2175_p1 = scmp.eq.s32.totalorder %s1795_s23, 0  ;;  %p284_p3 = scmp.eq.s32.totalorder %s2160_s24, 1 }
  0x17   : > { %p1154_p5 = scmp.ge.s32.totalorder %s1684_s22, 1  ;;  %p347_p7 = scmp.lt.s32.totalorder %s1684_s22, 3 }
  0x18   : > { %p1806_p4 = por %p2175_p1, %p70_p0  ;;  %p1811_p6 = por %p284_p3, %p70_p0 }
  0x19   : > { %p1816_p8 = pnand %p1154_p5, %p347_p7  ;;  %s1686_s28 = smov [#allocation8]  }
  0x1a   : > { %s2190_s25 = scalar_select %p1806_p4, 1, 0 }
  0x1b   : > { %s2191_s26 = scalar_select %p1811_p6, 1, 0 }
  0x1c   : > { %s2193_s27 = scalar_select %p1816_p8, 1, 0 }
  0x1d   : > { %2192 = sst [smem:[#allocation26_spill]] %s2191_s26  ;;  %s359_s29 = sshll.u32 %s1686_s28, 4  ;;  %s360_s29 = int_to_ptr.vmem [resolvable:$true] %s359_s29 }
  0x1e   : > { %p1276_p9 = pneg %p1816_p8  ;;  %s48_s12 = sadd.s32 1, %s1680_s21 }
  0x1f   : > { %s1385_s13 = scalar_lea.vmem %s360_s29, 512  ;;  %p1393_p5 = scmp.lt.s32.totalorder %s360_s29, %s360_s29 }
  0x20   : > { %p1825_p11 = pnand %p1276_p9, %p2175_p1  ;;  %p1386_p13 = scmp.ne.s32.totalorder %s360_s29, %s1385_s13 }
  0x21   : > { %p1394_p7 = scmp.lt.s32.totalorder %s1385_s13, %s1385_s13 }
  0x22   : > { %p2176_p12 = pneg %p1825_p11 }
  0x23   : > { %p1395_p2 = por %p1394_p7, %p1393_p5 }
  0x24   : > { %p1388_p0 = pnand %p1386_p13, %p2176_p12 }
  0x26   : > { %p1389_p3 = pneg %p1388_p0 }
  0x28   : > { %p1396_p10 = pnand %p1395_p2, %p1389_p3 }
  0x2a   : > { %1399 = shalt.err (!%p1396_p10)
}
  0x2b   : > { %s2163_s14 = smov 128   ;;  %s2165_s15 = smov 8  }
  0x2c   : > { %s2195_s3 = sld [smem:[#allocation30_spill]]  ;;  %p50_p2 = scmp.ge.s32.totalorder %s48_s12, 2 }
  0x2d   : > { %s57_s13 = sadd.s32 1, %s1672_s19  ;;  %p64_p9 = scmp.ne.s32.totalorder %s1672_s19, %s1668_s18 }
  0x2e   : > { %p65_p10 = scmp.eq.s32.totalorder %s1684_s22, 0  ;;  %s2234_s12 = smov (%p50_p2, %s48_s12), 0 }
  0x2f   : > { %2196 = sst [smem:[#allocation27_spill]] %s2234_s12  ;;  %p2197_p0 = scmp.eq.s32.totalorder %s1795_s23, 1 }
  0x30   : > { %p66_p13 = por %p65_p10, %p64_p9  ;;  %s52_s26 = ssub.s32 %s1680_s21, %s2234_s12 }
  0x31   : > { %p1851_p3 = por %p2197_p0, %p64_p9  ;;  %p1309_p5 = scmp.lt.s32.totalorder %s1684_s22, 2 }
  0x32   : > { %1279 = dma.hbm_to_vmem [thread:$0]  (!%p1825_p11), %s2195_s3, 512, %s360_s29, [#allocation9], %s2163_s14, %s2163_s14, %s2165_s15  }
  0x33   : > { %s2198_s24 = scalar_select %p1851_p3, 1, 0 }
  0x34   : > { %p55_p7 = scmp.eq.s32.totalorder %s52_s26, 0  ;;  %s2169_s17 = sand.u32 1, %s1672_s19  }
  0x35   : > { %s1861_s29 = sshll.u32 %s2169_s17, 3  ;;  %s1864_s16 = sshll.u32 %s1680_s21, 7 }
  0x36   : > { %s1867_s28 = scalar_select %p55_p7, %s1672_s19, %s57_s13  }
  0x37   : > { %p1869_p2 = pnand %p1309_p5, %p66_p13  ;;  %s427_s15 = sand.u32 1, %s1684_s22  }
  0x38   : > { %2199 = sst [smem:[#allocation28_spill]] %s1867_s28  ;;  %s431_s11 = scalar_lea.vmem [#allocation5], %s1861_s29 }
  0x39   : > { %s2201_s1 = sld [smem:[#allocation29_spill]]  ;;  %s439_s17 = sshll.u32 %s431_s11, 4  ;;  %s440_s17 = int_to_ptr.vmem [resolvable:$true] %s439_s17 }
  0x3a   : > { %s1689_s9 = smov [#allocation10]   ;;  %s1879_s10 = scalar_lea.sflag [#allocation6], %s427_s15 }
  0x3b   : > { %s375_s21 = sshll.u32 %s1689_s9, 4  ;;  %p2177_p9 = pneg %p1869_p2  ;;  %s376_s21 = int_to_ptr.vmem [resolvable:$true] %s375_s21 }
  0x3c   : > { %s1413_s13 = scalar_lea.vmem %s440_s17, 128  ;;  %s1690_s28 = smov [#allocation5]  }
  0x3d   : > { %p1414_p10 = scmp.ne.s32.totalorder %s440_s17, %s1413_s13  ;;  %s1418_s22 = sshll.u32 %s1690_s28, 4  ;;  %s1419_s22 = int_to_ptr.vmem [resolvable:$false] %s1418_s22 }
  0x3e   : > { %s1420_s3 = scalar_lea.vmem %s1419_s22, 256  ;;  %p1421_p5 = scmp.lt.s32.totalorder %s440_s17, %s1419_s22 }
  0x3f   : > { %s437_s26 = scalar_lea.hbm %s2201_s1, %s1864_s16  ;;  %p1416_p13 = pnand %p1414_p10, %p2177_p9 }
  0x40   : > { %p1422_p7 = scmp.lt.s32.totalorder %s1420_s3, %s1413_s13 }
  0x41   : > { %p1417_p0 = pneg %p1416_p13 }
  0x42   : > { %p1423_p1 = por %p1422_p7, %p1421_p5 }
  0x44   : > { %p1424_p12 = pnand %p1423_p1, %p1417_p0 }
  0x46   : > { %1427 = shalt.err (!%p1424_p12)
}
  0x47   : > { %1292 = dma.hbm_to_vmem [thread:$0]  (!%p1869_p2), %s437_s26, 128, %s440_s17, %s1879_s10  }
  0x48   : > { %s1439_s9 = scalar_lea.vmem %s376_s21, 512  ;;  %p2202_p10 = pneg %p1825_p11 }
  0x49   : > { %p1440_p6 = scmp.ne.s32.totalorder %s376_s21, %s1439_s9  ;;  %p1447_p3 = scmp.lt.s32.totalorder %s376_s21, %s376_s21 }
  0x4a   : > { %p1448_p4 = scmp.lt.s32.totalorder %s1439_s9, %s1439_s9 }
  0x4b   : > { %p1442_p13 = pnand %p1440_p6, %p2202_p10 }
  0x4c   : > { %p1449_p8 = por %p1448_p4, %p1447_p3 }
  0x4d   : > { %p1443_p9 = pneg %p1442_p13 }
  0x4f   : > { %p1450_p5 = pnand %p1449_p8, %p1443_p9 }
  0x51   : > { %1453 = shalt.err (!%p1450_p5)
}
  0x52   : > { %s2203_s11 = smov 8   ;;  %s2204_s22 = smov 128  }
  0x53   : > { %s2205_s5 = sld [smem:[#allocation31_spill]]  ;;  %s1691_s17 = smov [#allocation11]  }
  0x54   : > { %s391_s28 = sshll.u32 %s1691_s17, 4  ;;  %p2206_p6 = pmov %p2202_p10  ;;  %s392_s28 = int_to_ptr.vmem [resolvable:$true] %s391_s28 }
  0x55   : > { %s1465_s26 = scalar_lea.vmem %s392_s28, 512  ;;  %p1473_p12 = scmp.lt.s32.totalorder %s392_s28, %s392_s28 }
  0x56   : > { %p1466_p1 = scmp.ne.s32.totalorder %s392_s28, %s1465_s26  ;;  %p1474_p3 = scmp.lt.s32.totalorder %s1465_s26, %s1465_s26 }
  0x58   : > { %p1468_p4 = pnand %p1466_p1, %p2206_p6  ;;  %p1475_p9 = por %p1474_p3, %p1473_p12 }
  0x59   : > { %1282 = dma.hbm_to_vmem [thread:$0]  (!%p1825_p11), %s2205_s5, 512, %s376_s21, [#allocation9], %s2204_s22, %s2204_s22, %s2203_s11  }
  0x5a   : > { %p1469_p8 = pneg %p1468_p4 }
  0x5c   : > { %p1476_p0 = pnand %p1475_p9, %p1469_p8 }
  0x5e   : > { %1479 = shalt.err (!%p1476_p0)
}
  0x5f   : > { %1285 = dma.hbm_to_vmem [thread:$0]  (!%p1825_p11), %s2155_s7, 512, %s392_s28, [#allocation12], %s2204_s22, %s2204_s22, %s2203_s11  }
  0x60   : > { %s418_s12 = scalar_lea.hbm %s2148_s0, %s1864_s16  ;;  %s412_s15 = scalar_lea.vmem [#allocation2], %s1861_s29 }
  0x61   : > { %s420_s17 = sshll.u32 %s412_s15, 4  ;;  %s2207_s26 = sand.u32 1, %s1672_s19   ;;  %s421_s17 = int_to_ptr.vmem [resolvable:$true] %s420_s17 }
  0x62   : > { %s409_s30 = scalar_lea.sflag [#allocation3], %s2207_s26  ;;  %s1493_s1 = scalar_lea.vmem %s421_s17, 128 }
  0x63   : > { %p1494_p7 = scmp.ne.s32.totalorder %s421_s17, %s1493_s1  ;;  %p2208_p10 = pneg %p1869_p2 }
  0x64   : > { %s1692_s21 = smov [#allocation2]  }
  0x65   : > { %p1496_p13 = pnand %p1494_p7, %p2208_p10  ;;  %s1498_s13 = sshll.u32 %s1692_s21, 4  ;;  %s1499_s13 = int_to_ptr.vmem [resolvable:$false] %s1498_s13 }
  0x66   : > { %s1500_s5 = scalar_lea.vmem %s1499_s13, 256  ;;  %p1501_p11 = scmp.lt.s32.totalorder %s421_s17, %s1499_s13 }
  0x67   : > { %p1497_p5 = pneg %p1496_p13  ;;  %p1502_p1 = scmp.lt.s32.totalorder %s1500_s5, %s1493_s1 }
  0x69   : > { %p1503_p6 = por %p1502_p1, %p1501_p11 }
  0x6b   : > { %p1504_p4 = pnand %p1503_p6, %p1497_p5 }
  0x6d   : > { %1507 = shalt.err (!%p1504_p4)
}
  0x6e   : > { %1289 = dma.hbm_to_vmem [thread:$0]  (!%p1869_p2), %s418_s12, 128, %s421_s17, %s409_s30  }
  0x6f   : > { %s456_s28 = scalar_lea.hbm %s2150_s2, %s1864_s16  ;;  %s450_s3 = scalar_lea.vmem [#allocation7], %s1861_s29 }
  0x70   : > { %s458_s9 = sshll.u32 %s450_s3, 4  ;;  %p2209_p12 = pmov %p2208_p10  ;;  %s459_s9 = int_to_ptr.vmem [resolvable:$true] %s458_s9 }
  0x71   : > { %s1521_s15 = scalar_lea.vmem %s459_s9, 128  ;;  %s1693_s1 = smov [#allocation7]  }
  0x72   : > { %p1522_p8 = scmp.ne.s32.totalorder %s459_s9, %s1521_s15  ;;  %s1526_s5 = sshll.u32 %s1693_s1, 4  ;;  %s1527_s5 = int_to_ptr.vmem [resolvable:$false] %s1526_s5 }
  0x73   : > { %s1528_s26 = scalar_lea.vmem %s1527_s5, 256  ;;  %p1529_p0 = scmp.lt.s32.totalorder %s459_s9, %s1527_s5 }
  0x74   : > { %p1524_p3 = pnand %p1522_p8, %p2209_p12  ;;  %p1530_p7 = scmp.lt.s32.totalorder %s1528_s26, %s1521_s15 }
  0x76   : > { %p1525_p9 = pneg %p1524_p3  ;;  %p1531_p10 = por %p1530_p7, %p1529_p0 }
  0x78   : > { %p1532_p13 = pnand %p1531_p10, %p1525_p9 }
  0x7a   : > { %1535 = shalt.err (!%p1532_p13)
}
  0x7b   : > { %1295 = dma.hbm_to_vmem [thread:$0]  (!%p1869_p2), %s456_s28, 128, %s459_s9, %s1879_s10  }
  0x7c   : > { %p2210_p5 = scmp.ne.s32.totalorder %s2193_s27, 0 }
  0x7d   : > { %s1937_s29 = sand.u32 (!%p2210_p5), 1, %s1668_s18   ;;  %p2211_p11 = scmp.ne.s32.totalorder (!%p2210_p5), %s2190_s25, 0 }
  0x7e   : > { %467 = sbr.rel (%p2210_p5) target bundleno = 526 (0x20e), region = 56  ;;  %s1940_s16 = sshll.u32 (!%p2210_p5), %s1937_s29, 3 }
  0x7f   : > { %s470_s12 = scalar_lea.sflag (!%p2210_p5), [#allocation3], %s1937_s29  ;;  %s473_s17 = scalar_lea.vmem (!%p2210_p5), [#allocation2], %s1940_s16 }
  0x83   : > { %1639 = dma.done.wait (%p2211_p11), %s470_s12, 128  }
  0x84   : > { %1641 = vsyncadd (%p2211_p11), %s470_s12, 4294967168  ;;  %s478_s10 = sand.u32 1, %s1795_s23   ;;  %s482_s14 = scalar_lea.vmem [#allocation5], %s1940_s16 }
  0x85   : > { %s479_s27 = scalar_lea.sflag [#allocation6], %s478_s10 }
  0x86   : > { %1643 = dma.done.wait (%p2211_p11), %s479_s27, 256  }
  0x87   : > { %1645 = vsyncadd (%p2211_p11), %s479_s27, 4294967040  ;;  %s491_s30 = scalar_lea.vmem [#allocation7], %s1940_s16  ;;  %p2212_p2 = scmp.eq.s32.totalorder %s1795_s23, 0 }
  0x89   : > { %1647 = dma.done.wait (%p2212_p2), [#allocation9], 1024   ;;  %p2213_p1 = pmov %p2212_p2 }
  0x8b   : > { %1649 = vsyncadd (%p2213_p1), [#allocation9], 4294966272  ;;  %p2214_p6 = pmov %p2213_p1 }
  0x8c   : > { %p2215_p4 = pmov %p2213_p1 }
  0x8d   : > { %1651 = dma.done.wait (%p2214_p6), [#allocation12], 512  }
  0x8e   : > { %1653 = vsyncadd (%p2215_p4), [#allocation12], 4294966784  ;;  %v1694_v0 = vmov 0.0   ;;  %vm1695_vm0 = vmmov 0   ;;  %v670_v1 = vld [vmem:[#allocation10 + $0x18] sm:$0xff]  ;;  %v669_v3 = vld [vmem:[#allocation10 + $0x10] sm:$0xff] }
  0x8f   : > { %1230 = vmatprep.subr.mxu1 %v1694_v0  ;;  %1219 = vmatprep.subr.mxu0 %v1694_v0  ;;  %v566_v2 = vld [vmem:[#allocation8 + $0x18] sm:$0xff]  ;;  %v565_v4 = vld [vmem:[#allocation8 + $0x10] sm:$0xff]  ;;  %v668_v5 = vld [vmem:[#allocation10 + $0x8] sm:$0xff]  ;;  %vm574_vm1 = vcmask 261120   ;;  %s1172_s25 = sshll.u32 %s1937_s29, 5  ;;  %vm648_vm2 = vcmask 64512  }
  0x90   : > { %1238 = vmatprep.mubr.msk.f32.mxu1 %vm1695_vm0, %v1694_v0  ;;  %1227 = vmatprep.mubr.msk.f32.mxu0 %vm1695_vm0, %v1694_v0  ;;  %v564_v6 = vld [vmem:[#allocation8 + $0x8] sm:$0xff]  ;;  %v667_v7 = vld [vmem:[#allocation10] sm:$0xff]  ;;  %v562_v10 = vld [vmem:[%s473_s17] sm:$0xff]  ;;  %s1984_s28 = scalar_lea.vmem [#allocation14], %s1172_s25  ;;  %s1696_s3 = smov 104  }
  0x91   : > { %1231 = vmatpush3.msra.mxu1 %v670_v1  ;;  %1220 = vmatpush3.msra.mxu0 %v566_v2  ;;  %v563_v8 = vld [vmem:[#allocation8] sm:$0xff]  ;;  %v772_v11 = vld [vmem:[#allocation11 + $0x18] sm:$0xff]  ;;  %v771_v12 = vld [vmem:[#allocation11 + $0x10] sm:$0xff]  ;;  %s1697_s9 = smov 120   ;;  %s1988_s15 = scalar_lea.vmem [#allocation13], %s1172_s25 }
  0x92   : > { %1232 = vmatprep.subr.mxu1 %v1694_v0  ;;  %1221 = vmatprep.subr.mxu0 %v1694_v0  ;;  %v666_v9 = vld [vmem:[%s482_s14] sm:$0xff]  ;;  %v768_v15 = vld [vmem:[%s491_s30] sm:$0xff]  ;;  %s1698_s1 = smov 112   ;;  %s1995_s16 = scalar_lea.vmem [#allocation16], %s1172_s25 }
  0x93   : > { %1233 = vmatpush3.msra.mxu1 %v669_v3  ;;  %1222 = vmatpush3.msra.mxu0 %v565_v4  ;;  %v770_v13 = vld [vmem:[#allocation11 + $0x8] sm:$0xff]  ;;  %v769_v14 = vld [vmem:[#allocation11] sm:$0xff]  ;;  %v1180_v16 = vld [vmem:[%s2154_s6] ss:$0 sm:$0xff]  ;;  %s912_s12 = sshll.u32 %s1984_s28, 4  ;;  %s2001_s17 = sshll.u32 %s1676_s20, 9  ;;  %s2003_s12 = int_to_ptr.vmem [resolvable:$true] %s912_s12 }
  0x94   : > { %1234 = vmatprep.subr.mxu1 %v1694_v0  ;;  %1223 = vmatprep.subr.mxu0 %v1694_v0  ;;  %v1175_v17 = vld [vmem:[%s2152_s4] ss:$0 sm:$0xff]  ;;  %s895_s27 = sshll.u32 %s1988_s15, 4  ;;  %s2216_s25 = sld [smem:[#allocation33_spill]]  ;;  %s2016_s27 = int_to_ptr.vmem [resolvable:$true] %s895_s27 }
  0x95   : > { %1235 = vmatpush3.msra.mxu1 %v668_v5  ;;  %1224 = vmatpush3.msra.mxu0 %v564_v6  ;;  %v1185_v24 = vld [vmem:[%s2156_s8] ss:$0 sm:$0xff]  ;;  %s2024_s20 = scalar_lea.sflag [#allocation15], %s478_s10  ;;  %s1536_s13 = scalar_lea.vmem %s2003_s12, 512 }
  0x96   : > { %1236 = vmatprep.subr.mxu1 %v1694_v0  ;;  %1225 = vmatprep.subr.mxu0 %v1694_v0  ;;  %p1537_p8 = scmp.ne.s32.totalorder %s2003_s12, %s1536_s13  ;;  %p2217_p12 = scmp.ne.s32.totalorder %s2198_s24, 0 }
  0x97   : > { %1237 = vmatpush3.msra.mxu1 %v667_v7  ;;  %1226 = vmatpush3.msra.mxu0 %v563_v8  ;;  %s1699_s11 = smov [#allocation14]  }
  0x98   : > { %1239 = vmatmul.mubr.msk.f32.vlgmr.msra.gmra.mxu1 %vm574_vm1, %v666_v9  ;;  %1241 = vmatprep.subr.mxu0 %v1694_v0  ;;  %p1538_p3 = pnand %p1537_p8, %p2217_p12  ;;  %s1540_s22 = sshll.u32 %s1699_s11, 4  ;;  %s1541_s22 = int_to_ptr.vmem [resolvable:$false] %s1540_s22 }
  0x99   : > { %1228 = vmatmul.mubr.msk.f32.vlgmr.msra.gmra.mxu0 %vm574_vm1, %v562_v10  ;;  %p1543_p0 = scmp.lt.s32.totalorder %s2003_s12, %s1541_s22 }
  0x9a   : > { %1242 = vmatpush3.msra.mxu0 %v772_v11  ;;  %1249 = vmatprep.mubr.msk.f32.mxu0 %vm1695_vm0, %v1694_v0  ;;  %s2014_s21 = scalar_lea.hbm %s2216_s25, %s2001_s17  ;;  %p1539_p9 = pneg %p1538_p3 }
  0x9b   : > { %1243 = vmatprep.subr.mxu0 %v1694_v0 }
  0x9c   : > { %1244 = vmatpush3.msra.mxu0 %v771_v12 }
  0x9d   : > { %1245 = vmatprep.subr.mxu0 %v1694_v0 }
  0x9e   : > { %1246 = vmatpush3.msra.mxu0 %v770_v13 }
  0x9f   : > { %1247 = vmatprep.subr.mxu0 %v1694_v0 }
  0xa0   : > { %1248 = vmatpush3.msra.mxu0 %v769_v14 }
  0xa1   : > { %1250 = vmatmul.mubr.msk.f32.vlgmr.msra.gmra.mxu0 %vm574_vm1, %v768_v15 }
 0x158   : > { %v747_v18 = vpop.f32.mrf.mxu1 }
 0x159   : > { %v748_v19 = vadd.f32 %v1180_v16, %v747_v18  ;;  %v644_v20 = vpop.f32.mrf.mxu0 }
 0x15a   : > { %v1240_v21 = vpop.f32.mrf.mxu1  ;;  %v645_v22 = vadd.f32 %v1175_v17, %v644_v20 }
 0x15b   : > { %751 = vst.msk [vmem:[%s1984_s28] sm:$0xff] %vm648_vm2, %v748_v19  ;;  %763 = vrot.lane.b32.xlu1 %v748_v19, %s1696_s3  ;;  %753 = vrot.lane.b32.xlu0 %v748_v19, %s1697_s9  ;;  %v1229_v23 = vpop.f32.mrf.mxu0 }
 0x15c   : > { %649 = vst.msk [vmem:[%s1988_s15] sm:$0xff] %vm648_vm2, %v645_v22 }
 0x15f   : > { %758 = vrot.lane.b32.xlu0 %v748_v19, %s1698_s1  ;;  %651 = vrot.lane.b32.xlu1 %v645_v22, %s1697_s9 }
 0x161   : > { %v849_v25 = vpop.f32.mrf.mxu0 }
 0x162   : > { %v850_v26 = vadd.f32 %v1185_v24, %v849_v25 }
 0x163   : > { %656 = vrot.lane.b32.xlu0 %v645_v22, %s1698_s1  ;;  %661 = vrot.lane.b32.xlu1 %v645_v22, %s1696_s3  ;;  %v1251_v27 = vpop.f32.mrf.mxu0 }
 0x164   : > { %853 = vst.msk [vmem:[%s1995_s16] sm:$0xff] %vm648_vm2, %v850_v26 }
 0x167   : > { %860 = vrot.lane.b32.xlu1 %v850_v26, %s1698_s1  ;;  %855 = vrot.lane.b32.xlu0 %v850_v26, %s1697_s9 }
 0x16b   : > { %865 = vrot.lane.b32.xlu0 %v850_v26, %s1696_s3  ;;  %s1542_s3 = scalar_lea.vmem %s1541_s22, 1024 }
 0x16c   : > { %p1544_p7 = scmp.lt.s32.totalorder %s1542_s3, %s1536_s13 }
 0x16e   : > { %p1545_p10 = por %p1544_p7, %p1543_p0 }
 0x170   : > { %p1546_p13 = pnand %p1545_p10, %p1539_p9 }
 0x1cd   : > { %v764_v28 = vpop.permute.xlu1 %763  ;;  %v754_v29 = vpop.permute.xlu0 %753 }
 0x1ce   : > { %1184 = vst.msk [vmem:[%s1984_s28 + $0x18] sm:$0xff] %vm648_vm2, %v764_v28  ;;  %1182 = vst.msk [vmem:[%s1984_s28 + $0x8] sm:$0xff] %vm648_vm2, %v754_v29 }
 0x1d1   : > { %v759_v30 = vpop.permute.xlu0 %758  ;;  %v652_v31 = vpop.permute.xlu1 %651 }
 0x1d2   : > { %1183 = vst.msk [vmem:[%s1984_s28 + $0x10] sm:$0xff] %vm648_vm2, %v759_v30  ;;  %1177 = vst.msk [vmem:[%s1988_s15 + $0x8] sm:$0xff] %vm648_vm2, %v652_v31 }
 0x1d3   : > { %1549 = shalt.err (!%p1546_p13)
}
 0x1d4   : > { %s1550_s23 = scalar_lea.hbm %s2014_s21, 512  ;;  %s1554_s9 = scalar_lea.hbm %s2216_s25, 1024 }
 0x1d5   : > { %p1551_p5 = scmp.ne.s32.totalorder %s2014_s21, %s1550_s23  ;;  %p1555_p1 = scmp.lt.s32.totalorder %s2014_s21, %s2216_s25 }
 0x1d6   : > { %p1556_p6 = scmp.lt.s32.totalorder %s1554_s9, %s1550_s23 }
 0x1d7   : > { %p1552_p11 = pnand %p1551_p5, %p2217_p12 }
 0x1d8   : > { %p1557_p4 = por %p1556_p6, %p1555_p1 }
 0x1d9   : > { %p1553_p2 = pneg %p1552_p11 }
 0x1db   : > { %p1558_p8 = pnand %p1557_p4, %p1553_p2 }
 0x1dd   : > { %1561 = shalt.err (!%p1558_p8)
}
 0x1de   : > { %s1700_s26 = smov 128   ;;  %s1701_s14 = smov 8   ;;  %v657_v32 = vpop.permute.xlu0 %656  ;;  %v662_v33 = vpop.permute.xlu1 %661 }
 0x1df   : > { %1271 = dma.vmem_to_hbm [thread:$0]  (%p2217_p12), %s2003_s12, 512, %s2014_s21, %s2024_s20, %s1700_s26, %s1700_s26, %s1701_s14  }
 0x1e0   : > { %s2218_s11 = sld [smem:[#allocation32_spill]]  ;;  %1178 = vst.msk [vmem:[%s1988_s15 + $0x10] sm:$0xff] %vm648_vm2, %v657_v32  ;;  %1179 = vst.msk [vmem:[%s1988_s15 + $0x18] sm:$0xff] %vm648_vm2, %v662_v33  ;;  %s871_s3 = scalar_lea.sflag [#allocation4], %s1937_s29 }
 0x1e1   : > { %s1562_s23 = scalar_lea.vmem %s2016_s27, 512  ;;  %s1702_s10 = smov [#allocation13]  }
 0x1e2   : > { %p1563_p3 = scmp.ne.s32.totalorder %s2016_s27, %s1562_s23  ;;  %s1566_s28 = sshll.u32 %s1702_s10, 4  ;;  %s1567_s28 = int_to_ptr.vmem [resolvable:$false] %s1566_s28 }
 0x1e3   : > { %s1568_s12 = scalar_lea.vmem %s1567_s28, 1024  ;;  %p1569_p7 = scmp.lt.s32.totalorder %s2016_s27, %s1567_s28 }
 0x1e4   : > { %p1564_p9 = pnand %p1563_p3, %p2217_p12  ;;  %p1570_p10 = scmp.lt.s32.totalorder %s1568_s12, %s1562_s23 }
 0x1e6   : > { %s2054_s22 = scalar_lea.hbm %s2218_s11, %s2001_s17  ;;  %p1565_p0 = pneg %p1564_p9 }
 0x1e7   : > { %p1571_p13 = por %p1570_p10, %p1569_p7 }
 0x1e9   : > { %p1572_p5 = pnand %p1571_p13, %p1565_p0 }
 0x1eb   : > { %1575 = shalt.err (!%p1572_p5)
}
 0x1ec   : > { %s1576_s15 = scalar_lea.hbm %s2054_s22, 512  ;;  %s1580_s9 = scalar_lea.hbm %s2218_s11, 1024 }
 0x1ed   : > { %p1577_p11 = scmp.ne.s32.totalorder %s2054_s22, %s1576_s15  ;;  %p1581_p6 = scmp.lt.s32.totalorder %s2054_s22, %s2218_s11 }
 0x1ee   : > { %p1582_p4 = scmp.lt.s32.totalorder %s1580_s9, %s1576_s15 }
 0x1ef   : > { %p1578_p2 = pnand %p1577_p11, %p2217_p12 }
 0x1f0   : > { %p1583_p8 = por %p1582_p4, %p1581_p6 }
 0x1f1   : > { %p1579_p1 = pneg %p1578_p2 }
 0x1f3   : > { %p1584_p3 = pnand %p1583_p8, %p1579_p1 }
 0x1f5   : > { %1587 = shalt.err (!%p1584_p3)
}
 0x1f6   : > { %1270 = dma.vmem_to_hbm [thread:$0]  (%p2217_p12), %s2016_s27, 512, %s2054_s22, %s871_s3, %s1700_s26, %s1700_s26, %s1701_s14   ;;  %v861_v34 = vpop.permute.xlu1 %860  ;;  %v856_v35 = vpop.permute.xlu0 %855 }
 0x1f7   : > { %s929_s30 = sshll.u32 %s1995_s16, 4  ;;  %1188 = vst.msk [vmem:[%s1995_s16 + $0x10] sm:$0xff] %vm648_vm2, %v861_v34  ;;  %1187 = vst.msk [vmem:[%s1995_s16 + $0x8] sm:$0xff] %vm648_vm2, %v856_v35  ;;  %s2219_s10 = sld [smem:[#allocation34_spill]]  ;;  %s2089_s30 = int_to_ptr.vmem [resolvable:$true] %s929_s30 }
 0x1f8   : > { %s1588_s27 = scalar_lea.vmem %s2089_s30, 512  ;;  %s1703_s22 = smov [#allocation16]  }
 0x1f9   : > { %p1589_p9 = scmp.ne.s32.totalorder %s2089_s30, %s1588_s27  ;;  %s1592_s3 = sshll.u32 %s1703_s22, 4  ;;  %s1593_s3 = int_to_ptr.vmem [resolvable:$false] %s1592_s3 }
 0x1fa   : > { %v866_v36 = vpop.permute.xlu0 %865  ;;  %s1594_s12 = scalar_lea.vmem %s1593_s3, 1024  ;;  %p1595_p10 = scmp.lt.s32.totalorder %s2089_s30, %s1593_s3 }
 0x1fb   : > { %1189 = vst.msk [vmem:[%s1995_s16 + $0x18] sm:$0xff] %vm648_vm2, %v866_v36  ;;  %p1590_p0 = pnand %p1589_p9, %p2217_p12  ;;  %p1596_p13 = scmp.lt.s32.totalorder %s1594_s12, %s1588_s27 }
 0x1fd   : > { %s2095_s28 = scalar_lea.hbm %s2219_s10, %s2001_s17  ;;  %p1591_p7 = pneg %p1590_p0 }
 0x1fe   : > { %p1597_p5 = por %p1596_p13, %p1595_p10 }
 0x200   : > { %p1598_p11 = pnand %p1597_p5, %p1591_p7 }
 0x202   : > { %1601 = shalt.err (!%p1598_p11)
}
 0x203   : > { %s1602_s17 = scalar_lea.hbm %s2095_s28, 512  ;;  %s1606_s29 = scalar_lea.hbm %s2219_s10, 1024 }
 0x204   : > { %p1603_p2 = scmp.ne.s32.totalorder %s2095_s28, %s1602_s17  ;;  %p1607_p4 = scmp.lt.s32.totalorder %s2095_s28, %s2219_s10 }
 0x205   : > { %p1608_p8 = scmp.lt.s32.totalorder %s1606_s29, %s1602_s17 }
 0x206   : > { %p1604_p1 = pnand %p1603_p2, %p2217_p12 }
 0x207   : > { %p1609_p3 = por %p1608_p8, %p1607_p4 }
 0x208   : > { %p1605_p6 = pneg %p1604_p1 }
 0x20a   : > { %p1610_p9 = pnand %p1609_p3, %p1605_p6 }
 0x20c   : > { %1613 = shalt.err (!%p1610_p9)
}
 0x20d   : > { %1272 = dma.vmem_to_hbm [thread:$0]  (%p2217_p12), %s2089_s30, 512, %s2095_s28, %s2024_s20, %s1700_s26, %s1700_s26, %s1701_s14  }
 0x20e PF: > { %s2220_s1 = sld [smem:[#allocation23_spill]] }
 0x20f   : > { %s2221_s5 = sld [smem:[#allocation26_spill]] }
 0x210   : > { %s2222_s13 = sld [smem:[#allocation25_spill]] }
 0x214   : > { %s944_s23 = sand.u32 1, %s2220_s1  }
 0x215   : > { %p2223_p0 = scmp.ne.s32.totalorder %s2221_s5, 0  ;;  %s945_s27 = scalar_lea.sflag [#allocation4], %s944_s23 }
 0x216   : > { %p2224_p7 = scmp.ge.s32.totalorder %s2222_s13, 2 }
 0x218   : > { %p1297_p10 = pnand %p2224_p7, %p2223_p0 }
 0x21a   : > { %p1298_p13 = pneg %p1297_p10 }
 0x21c   : > { %1655 = dma.done.wait (%p1298_p13), %s945_s27, 512  }
 0x21d   : > { %1657 = vsyncadd (%p1298_p13), %s945_s27, 4294966784  ;;  %s2225_s24 = sadd.s32 4294967294, %s2222_s13  }
 0x21e   : > { %s953_s22 = sand.u32 1, %s2225_s24  }
 0x21f   : > { %s954_s3 = scalar_lea.sflag [#allocation15], %s953_s22 }
 0x220   : > { %1659 = dma.done.wait (%p1298_p13), %s954_s3, 1024  }
 0x221   : > { %1661 = vsyncadd (%p1298_p13), %s954_s3, 4294966272  ;;  %s36_s22 = sadd.s32 1, %s2222_s13   ;;  %s2226_s20 = sld [smem:[#allocation28_spill]] }
 0x222   : > { %p33_p12 = scmp.ge.s32.totalorder %s36_s22, 4   ;;  %s2227_s26 = sld [smem:[#allocation24_spill]] }
 0x223   : > { %s2228_s21 = sld [smem:[#allocation27_spill]]  ;;  %s2229_s17 = smov %s1668_s18 }
 0x224   : > { %s2230_s18 = smov %s1672_s19  ;;  %35 = sbr.rel (!%p33_p12) target bundleno = 19 (0x13), region = 178 }
 0x227   : > { %s2231_s19 = smov %s2226_s20 }
 0x228   : > { %s2232_s20 = smov %s2227_s26 }
 0x229   :  { %968 = vsyncpa [#allocation3], 1 }
 0x22a   :  { %970 = vsyncpa [#allocation3 + $0x1], 1 }
 0x22b   :  { %971 = vsyncpa [#allocation6], 1 }
 0x22c   :  { %973 = vsyncpa [#allocation6 + $0x1], 1 }
 0x22d   :  { %974 = vsyncpa [#allocation9], 1 }
 0x22e   :  { %975 = vsyncpa [#allocation12], 1 }
 0x22f   :  { %976 = vsyncpa [#allocation4], 1 }
 0x230   :  { %978 = vsyncpa [#allocation4 + $0x1], 1 }
 0x231   :  { %979 = vsyncpa [#allocation15], 1 }
 0x232   :  { %981 = vsyncpa [#allocation15 + $0x1], 1 }

</bundles_post_ra>
